<compile_context>
chip_gen: v7x
topology: tpu7x:2x2x1
jax: 0.10.0
libtpu: 0.0.40
codegen_flags: <defaults>
</compile_context>

<pallas_src>
import functools

import numpy as np
import jax
import jax.numpy as jnp
from jax.experimental import pallas as pl
from jax.experimental.pallas import tpu as pltpu

LANES = 128
SUBLANES = 8
MAX_TILE_ROWS = 512   # 512 x 128 x 4B = 256 KiB per buffered tile (fits v5e/v6e/v7x)

# SMEM accumulator slots.
_S, _S2, _CNT, _SP, _S2P, _A, _B = 0, 1, 2, 3, 4, 5, 6


def _bn_filtered_moments_kernel(
    x_ref, gamma_ref, beta_ref,          # inputs
    bn_ref, mean_ref, var_ref,           # outputs
    acc_ref,                             # SMEM scratch (8,) f32
    *, n_valid, n_pad, thres, alpha, run_mean0, run_var0,
):
  p = pl.program_id(0)   # pass: 0 = full moments, 1 = filtered moments, 2 = normalize
  t = pl.program_id(1)   # row tile
  eps = jnp.float32(1e-10)

  @pl.when((p == 0) & (t == 0))
  def _init():
    acc_ref[_S] = 0.0
    acc_ref[_S2] = 0.0
    acc_ref[_CNT] = 0.0
    acc_ref[_SP] = 0.0
    acc_ref[_S2P] = 0.0

  # ---- pass 0: fused sum / sum-of-squares over the whole tensor ----
  @pl.when(p == 0)
  def _pass0():
    x = x_ref[...]
    acc_ref[_S] = acc_ref[_S] + jnp.sum(x)
    acc_ref[_S2] = acc_ref[_S2] + jnp.sum(x * x)

  # ---- pass 1: threshold filter via scalar bounds, fused filtered sums ----
  @pl.when(p == 1)
  def _pass1():
    @pl.when(t == 0)
    def _bounds():
      n = jnp.float32(n_valid)
      s = acc_ref[_S]
      mean = s / n
      var = (acc_ref[_S2] - s * mean) / (n - 1.0)      # unbiased (torch.var)
      sd = jnp.sqrt(var + eps)
      acc_ref[_A] = mean - thres * sd                  # lo
      acc_ref[_B] = mean + thres * sd                  # hi

    lo = acc_ref[_A]
    hi = acc_ref[_B]
    x = x_ref[...]
    sel = (x > lo) & (x < hi)
    xs = jnp.where(sel, x, 0.0)
    acc_ref[_CNT] = acc_ref[_CNT] + jnp.sum(sel.astype(jnp.float32))
    acc_ref[_SP] = acc_ref[_SP] + jnp.sum(xs)
    acc_ref[_S2P] = acc_ref[_S2P] + jnp.sum(xs * x)

  # ---- pass 2: running-stat blend + single-mul-add normalization ----
  @pl.when(p == 2)
  def _pass2():
    @pl.when(t == 0)
    def _finalize():
      lo = acc_ref[_A]
      hi = acc_ref[_B]
      # Zero-padded tail elements contribute nothing to the filtered sums but
      # are counted by the bound test iff lo < 0 < hi; subtract them.
      pad_in_sel = jnp.where((lo < 0.0) & (hi > 0.0), jnp.float32(n_pad), 0.0)
      cnt = acc_ref[_CNT] - pad_in_sel
      sp = acc_ref[_SP]
      mean_p = sp / cnt
      var_p = (acc_ref[_S2P] - sp * mean_p) / (cnt - 1.0)
      new_mean = alpha * run_mean0 + (1.0 - alpha) * mean_p
      new_var = alpha * run_var0 + (1.0 - alpha) * var_p
      mean_ref[0] = new_mean
      var_ref[0] = new_var
      scale = gamma_ref[0] / jnp.sqrt(new_var + eps)
      acc_ref[_A] = scale                               # reuse slots: scale
      acc_ref[_B] = beta_ref[0] - new_mean * scale      # shift

    bn_ref[...] = x_ref[...] * acc_ref[_A] + acc_ref[_B]


def bn1d_filtered_moments(xorig, gamma, beta, *, thres=4.0, alpha=0.9,
                          run_mean=0.0, run_var=1.0):
  """Returns (bn, new_running_mean, new_running_var)."""
  orig_shape = xorig.shape
  n = int(np.prod(orig_shape))
  x_flat = xorig.reshape(-1).astype(jnp.float32)

  # Lane-dense layout: (rows_pad, 128), rows_pad a multiple of the tile height.
  # When n is divisible by 8*128 this is a pure reshape (no copy); otherwise a
  # single jnp.pad and a tail slice on the way out.
  rows = -(-n // LANES)
  rows_pad = max(SUBLANES, -(-rows // SUBLANES) * SUBLANES)
  if rows_pad <= MAX_TILE_ROWS:
    tile_rows = rows_pad
  else:
    tile_rows = MAX_TILE_ROWS
    rows_pad = -(-rows_pad // tile_rows) * tile_rows
  num_tiles = rows_pad // tile_rows
  n_pad = rows_pad * LANES - n

  if n_pad:
    x_flat = jnp.pad(x_flat, (0, n_pad))
  x2d = x_flat.reshape(rows_pad, LANES)

  gamma1 = jnp.asarray(gamma, jnp.float32).reshape(1)
  beta1 = jnp.asarray(beta, jnp.float32).reshape(1)

  kernel = functools.partial(
      _bn_filtered_moments_kernel,
      n_valid=n, n_pad=n_pad, thres=float(thres), alpha=float(alpha),
      run_mean0=float(run_mean), run_var0=float(run_var))

  bn2d, new_mean, new_var = pl.pallas_call(
      kernel,
      grid=(3, num_tiles),
      out_shape=(jax.ShapeDtypeStruct((rows_pad, LANES), jnp.float32),
                 jax.ShapeDtypeStruct((1,), jnp.float32),
                 jax.ShapeDtypeStruct((1,), jnp.float32)),
      in_specs=[
          pl.BlockSpec((tile_rows, LANES), lambda p, t: (t, 0)),
          pl.BlockSpec(memory_space=pltpu.MemorySpace.SMEM),
          pl.BlockSpec(memory_space=pltpu.MemorySpace.SMEM),
      ],
      out_specs=(
          # bn is produced only on the final (normalize) pass; pin the block
          # index at 0 during the reduction passes so each bn tile is written
          # back to HBM exactly once.
          pl.BlockSpec((tile_rows, LANES),
                       lambda p, t: (jnp.where(p == 2, t, 0), 0)),
          pl.BlockSpec(memory_space=pltpu.MemorySpace.SMEM),
          pl.BlockSpec(memory_space=pltpu.MemorySpace.SMEM),
      ),
      scratch_shapes=[pltpu.SMEM((8,), jnp.float32)],
      compiler_params=pltpu.CompilerParams(
          dimension_semantics=("arbitrary", "arbitrary")),
  )(x2d, gamma1, beta1)

  if n_pad:
    bn = bn2d.reshape(-1)[:n].reshape(orig_shape)
  else:
    bn = bn2d.reshape(orig_shape)
  return bn, new_mean[0], new_var[0]


def _reference(xorig, gamma, beta, thres=4.0, alpha=0.9, run_mean=0.0, run_var=1.0):
  """Plain-JAX mirror of the PyTorch forward, for verification."""
  x = xorig.reshape(-1).astype(jnp.float32)
  eps = 1e-10
  mean = jnp.mean(x)
  var = jnp.var(x, ddof=1)
  normalized = (x - mean) / jnp.sqrt(var + eps)
  sel = (normalized < thres) & (normalized > -thres)
  cnt = jnp.sum(sel.astype(jnp.float32))
  mean_p = jnp.sum(jnp.where(sel, x, 0.0)) / cnt
  var_p = jnp.sum(jnp.where(sel, (x - mean_p) ** 2, 0.0)) / (cnt - 1.0)
  new_mean = alpha * run_mean + (1.0 - alpha) * mean_p
  new_var = alpha * run_var + (1.0 - alpha) * var_p
  bn = gamma * (xorig - new_mean) / jnp.sqrt(new_var + eps) + beta
  return bn, new_mean, new_var


def _check(x, gamma, beta):
  bn, new_mean, new_var = bn1d_filtered_moments(x, gamma, beta, thres=4.0)
  jax.block_until_ready(bn)
  bn_ref, mean_ref, var_ref = _reference(x, gamma, beta, thres=4.0)
  np.testing.assert_allclose(np.asarray(bn), np.asarray(bn_ref),
                             rtol=1e-4, atol=1e-5)
  np.testing.assert_allclose(float(new_mean), float(mean_ref), rtol=1e-4, atol=1e-6)
  np.testing.assert_allclose(float(new_var), float(var_ref), rtol=1e-4, atol=1e-6)


if __name__ == "__main__":
  key = jax.random.PRNGKey(0)
  # NCHW input, as the module would see from a conv stack (n % 1024 == 0 path).
  x = jax.random.normal(key, (2, 4, 16, 16), dtype=jnp.float32) * 2.0
  # Inject outliers so the |normalized| < Thres filter actually prunes.
  x = x.at[0, 0, 0, 0].set(25.0).at[1, 3, 7, 7].set(-30.0)

  gamma = jnp.float32(1.0)   # parameters exactly as in __init__
  beta = jnp.float32(0.0)

  _check(x, gamma, beta)

  # Non-aligned size to exercise the padded-tail / count-correction path.
  x2 = jax.random.normal(jax.random.PRNGKey(1), (3, 5, 7), dtype=jnp.float32) * 2.0
  x2 = x2.at[0, 0, 0].set(20.0)
  _check(x2, gamma, beta)

  print("KERNEL_OK")
</pallas_src>

<mosaic_0001>
module attributes {stable_mosaic.version = 11 : i64} {
  func.func @_bn_filtered_moments_kernel(%arg0: i32, %arg1: i32, %arg2: memref<16x128xf32, #tpu.memory_space<vmem>>, %arg3: memref<1xf32, #tpu.memory_space<smem>>, %arg4: memref<1xf32, #tpu.memory_space<smem>>, %arg5: memref<16x128xf32, #tpu.memory_space<vmem>>, %arg6: memref<1xf32, #tpu.memory_space<smem>>, %arg7: memref<1xf32, #tpu.memory_space<smem>>, %arg8: memref<8xf32, #tpu.memory_space<smem>>) attributes {dimension_semantics = [#tpu.dimension_semantics<arbitrary>, #tpu.dimension_semantics<arbitrary>], iteration_bounds = array<i64: 3, 1>, scalar_prefetch = 0 : i64, scratch_operands = 1 : i64, tpu.core_type = #tpu.core_type<tc>, window_params = [{transform_indices = @transform_0, window_bounds = array<i64: 16, 128>}, {transform_indices = @transform_1, window_bounds = array<i64: 1>}, {transform_indices = @transform_2, window_bounds = array<i64: 1>}, {transform_indices = @transform_3, window_bounds = array<i64: 16, 128>}, {transform_indices = @transform_4, window_bounds = array<i64: 1>}, {transform_indices = @transform_5, window_bounds = array<i64: 1>}]} {
    %c0_i32 = arith.constant 0 : i32
    %0 = arith.cmpi eq, %arg0, %c0_i32 : i32
    %c0_i32_0 = arith.constant 0 : i32
    %1 = arith.cmpi eq, %arg1, %c0_i32_0 : i32
    %2 = arith.andi %0, %1 : i1
    %3 = arith.extui %2 : i1 to i32
    %c0_i32_1 = arith.constant 0 : i32
    %4 = arith.cmpi ne, %3, %c0_i32_1 : i32
    scf.if %4 {
      %cst_7 = arith.constant 0.000000e+00 : f32
      %c0 = arith.constant 0 : index
      %14 = memref.load %arg8[%c0] : memref<8xf32, #tpu.memory_space<smem>>
      memref.store %cst_7, %arg8[%c0] : memref<8xf32, #tpu.memory_space<smem>>
      %cst_8 = arith.constant 0.000000e+00 : f32
      %c1 = arith.constant 1 : index
      %15 = memref.load %arg8[%c1] : memref<8xf32, #tpu.memory_space<smem>>
      memref.store %cst_8, %arg8[%c1] : memref<8xf32, #tpu.memory_space<smem>>
      %cst_9 = arith.constant 0.000000e+00 : f32
      %c2 = arith.constant 2 : index
      %16 = memref.load %arg8[%c2] : memref<8xf32, #tpu.memory_space<smem>>
      memref.store %cst_9, %arg8[%c2] : memref<8xf32, #tpu.memory_space<smem>>
      %cst_10 = arith.constant 0.000000e+00 : f32
      %c3 = arith.constant 3 : index
      %17 = memref.load %arg8[%c3] : memref<8xf32, #tpu.memory_space<smem>>
      memref.store %cst_10, %arg8[%c3] : memref<8xf32, #tpu.memory_space<smem>>
      %cst_11 = arith.constant 0.000000e+00 : f32
      %c4 = arith.constant 4 : index
      %18 = memref.load %arg8[%c4] : memref<8xf32, #tpu.memory_space<smem>>
      memref.store %cst_11, %arg8[%c4] : memref<8xf32, #tpu.memory_space<smem>>
    } else {
    }
    %c0_i32_2 = arith.constant 0 : i32
    %5 = arith.cmpi eq, %arg0, %c0_i32_2 : i32
    %6 = arith.extui %5 : i1 to i32
    %c0_i32_3 = arith.constant 0 : i32
    %7 = arith.cmpi ne, %6, %c0_i32_3 : i32
    scf.if %7 {
      %c0 = arith.constant 0 : index
      %c0_7 = arith.constant 0 : index
      %14 = vector.load %arg2[%c0, %c0_7] : memref<16x128xf32, #tpu.memory_space<vmem>>, vector<16x128xf32>
      %c0_8 = arith.constant 0 : index
      %15 = memref.load %arg8[%c0_8] : memref<8xf32, #tpu.memory_space<smem>>
      %16 = vector.shape_cast %14 : vector<16x128xf32> to vector<1x16x128xf32>
      %cst_9 = arith.constant dense<0.000000e+00> : vector<1xf32>
      %17 = vector.multi_reduction <add>, %16, %cst_9 [1, 2] : vector<1x16x128xf32> to vector<1xf32>
      %18 = vector.shape_cast %17 : vector<1xf32> to vector<1x1x1xf32>
      %19 = vector.extract %18[0, 0, 0] : f32 from vector<1x1x1xf32>
      %20 = arith.addf %15, %19 : f32
      %c0_10 = arith.constant 0 : index
      %21 = memref.load %arg8[%c0_10] : memref<8xf32, #tpu.memory_space<smem>>
      memref.store %20, %arg8[%c0_10] : memref<8xf32, #tpu.memory_space<smem>>
      %c1 = arith.constant 1 : index
      %22 = memref.load %arg8[%c1] : memref<8xf32, #tpu.memory_space<smem>>
      %23 = arith.mulf %14, %14 : vector<16x128xf32>
      %24 = vector.shape_cast %23 : vector<16x128xf32> to vector<1x16x128xf32>
      %cst_11 = arith.constant dense<0.000000e+00> : vector<1xf32>
      %25 = vector.multi_reduction <add>, %24, %cst_11 [1, 2] : vector<1x16x128xf32> to vector<1xf32>
      %26 = vector.shape_cast %25 : vector<1xf32> to vector<1x1x1xf32>
      %27 = vector.extract %26[0, 0, 0] : f32 from vector<1x1x1xf32>
      %28 = arith.addf %22, %27 : f32
      %c1_12 = arith.constant 1 : index
      %29 = memref.load %arg8[%c1_12] : memref<8xf32, #tpu.memory_space<smem>>
      memref.store %28, %arg8[%c1_12] : memref<8xf32, #tpu.memory_space<smem>>
    } else {
    }
    %c1_i32 = arith.constant 1 : i32
    %8 = arith.cmpi eq, %arg0, %c1_i32 : i32
    %9 = arith.extui %8 : i1 to i32
    %cst = arith.constant 1.000000e-10 : f32
    %c0_i32_4 = arith.constant 0 : i32
    %10 = arith.cmpi ne, %9, %c0_i32_4 : i32
    scf.if %10 {
      %c0_i32_7 = arith.constant 0 : i32
      %14 = arith.cmpi eq, %arg1, %c0_i32_7 : i32
      %15 = arith.extui %14 : i1 to i32
      %c0_i32_8 = arith.constant 0 : i32
      %16 = arith.cmpi ne, %15, %c0_i32_8 : i32
      scf.if %16 {
        %c0_17 = arith.constant 0 : index
        %51 = memref.load %arg8[%c0_17] : memref<8xf32, #tpu.memory_space<smem>>
        %cst_18 = arith.constant 2.048000e+03 : f32
        %52 = arith.divf %51, %cst_18 : f32
        %c1 = arith.constant 1 : index
        %53 = memref.load %arg8[%c1] : memref<8xf32, #tpu.memory_space<smem>>
        %54 = arith.mulf %51, %52 : f32
        %55 = arith.subf %53, %54 : f32
        %cst_19 = arith.constant 2.048000e+03 : f32
        %cst_20 = arith.constant 1.000000e+00 : f32
        %56 = arith.subf %cst_19, %cst_20 : f32
        %57 = arith.divf %55, %56 : f32
        %58 = arith.addf %57, %cst : f32
        %59 = math.sqrt %58 : f32
        %cst_21 = arith.constant 4.000000e+00 : f32
        %60 = arith.mulf %cst_21, %59 : f32
        %61 = arith.subf %52, %60 : f32
        %c5_22 = arith.constant 5 : index
        %62 = memref.load %arg8[%c5_22] : memref<8xf32, #tpu.memory_space<smem>>
        memref.store %61, %arg8[%c5_22] : memref<8xf32, #tpu.memory_space<smem>>
        %cst_23 = arith.constant 4.000000e+00 : f32
        %63 = arith.mulf %cst_23, %59 : f32
        %64 = arith.addf %52, %63 : f32
        %c6_24 = arith.constant 6 : index
        %65 = memref.load %arg8[%c6_24] : memref<8xf32, #tpu.memory_space<smem>>
        memref.store %64, %arg8[%c6_24] : memref<8xf32, #tpu.memory_space<smem>>
      } else {
      }
      %c5 = arith.constant 5 : index
      %17 = memref.load %arg8[%c5] : memref<8xf32, #tpu.memory_space<smem>>
      %c6 = arith.constant 6 : index
      %18 = memref.load %arg8[%c6] : memref<8xf32, #tpu.memory_space<smem>>
      %c0 = arith.constant 0 : index
      %c0_9 = arith.constant 0 : index
      %19 = vector.load %arg2[%c0, %c0_9] : memref<16x128xf32, #tpu.memory_space<vmem>>, vector<16x128xf32>
      %20 = vector.broadcast %17 : f32 to vector<16x128xf32>
      %21 = arith.cmpf ogt, %19, %20 : vector<16x128xf32>
      %22 = vector.broadcast %18 : f32 to vector<16x128xf32>
      %23 = arith.cmpf olt, %19, %22 : vector<16x128xf32>
      %24 = arith.andi %21, %23 : vector<16x128xi1>
      %cst_10 = arith.constant 0.000000e+00 : f32
      %25 = vector.broadcast %cst_10 : f32 to vector<16x128xf32>
      %26 = arith.select %24, %19, %25 : vector<16x128xi1>, vector<16x128xf32>
      %c2 = arith.constant 2 : index
      %27 = memref.load %arg8[%c2] : memref<8xf32, #tpu.memory_space<smem>>
      %28 = arith.extui %24 : vector<16x128xi1> to vector<16x128xi32>
      %29 = arith.sitofp %28 : vector<16x128xi32> to vector<16x128xf32>
      %30 = vector.shape_cast %29 : vector<16x128xf32> to vector<1x16x128xf32>
      %cst_11 = arith.constant dense<0.000000e+00> : vector<1xf32>
      %31 = vector.multi_reduction <add>, %30, %cst_11 [1, 2] : vector<1x16x128xf32> to vector<1xf32>
      %32 = vector.shape_cast %31 : vector<1xf32> to vector<1x1x1xf32>
      %33 = vector.extract %32[0, 0, 0] : f32 from vector<1x1x1xf32>
      %34 = arith.addf %27, %33 : f32
      %c2_12 = arith.constant 2 : index
      %35 = memref.load %arg8[%c2_12] : memref<8xf32, #tpu.memory_space<smem>>
      memref.store %34, %arg8[%c2_12] : memref<8xf32, #tpu.memory_space<smem>>
      %c3 = arith.constant 3 : index
      %36 = memref.load %arg8[%c3] : memref<8xf32, #tpu.memory_space<smem>>
      %37 = vector.shape_cast %26 : vector<16x128xf32> to vector<1x16x128xf32>
      %cst_13 = arith.constant dense<0.000000e+00> : vector<1xf32>
      %38 = vector.multi_reduction <add>, %37, %cst_13 [1, 2] : vector<1x16x128xf32> to vector<1xf32>
      %39 = vector.shape_cast %38 : vector<1xf32> to vector<1x1x1xf32>
      %40 = vector.extract %39[0, 0, 0] : f32 from vector<1x1x1xf32>
      %41 = arith.addf %36, %40 : f32
      %c3_14 = arith.constant 3 : index
      %42 = memref.load %arg8[%c3_14] : memref<8xf32, #tpu.memory_space<smem>>
      memref.store %41, %arg8[%c3_14] : memref<8xf32, #tpu.memory_space<smem>>
      %c4 = arith.constant 4 : index
      %43 = memref.load %arg8[%c4] : memref<8xf32, #tpu.memory_space<smem>>
      %44 = arith.mulf %26, %19 : vector<16x128xf32>
      %45 = vector.shape_cast %44 : vector<16x128xf32> to vector<1x16x128xf32>
      %cst_15 = arith.constant dense<0.000000e+00> : vector<1xf32>
      %46 = vector.multi_reduction <add>, %45, %cst_15 [1, 2] : vector<1x16x128xf32> to vector<1xf32>
      %47 = vector.shape_cast %46 : vector<1xf32> to vector<1x1x1xf32>
      %48 = vector.extract %47[0, 0, 0] : f32 from vector<1x1x1xf32>
      %49 = arith.addf %43, %48 : f32
      %c4_16 = arith.constant 4 : index
      %50 = memref.load %arg8[%c4_16] : memref<8xf32, #tpu.memory_space<smem>>
      memref.store %49, %arg8[%c4_16] : memref<8xf32, #tpu.memory_space<smem>>
    } else {
    }
    %c2_i32 = arith.constant 2 : i32
    %11 = arith.cmpi eq, %arg0, %c2_i32 : i32
    %12 = arith.extui %11 : i1 to i32
    %cst_5 = arith.constant 1.000000e-10 : f32
    %c0_i32_6 = arith.constant 0 : i32
    %13 = arith.cmpi ne, %12, %c0_i32_6 : i32
    scf.if %13 {
      %c0_i32_7 = arith.constant 0 : i32
      %14 = arith.cmpi eq, %arg1, %c0_i32_7 : i32
      %15 = arith.extui %14 : i1 to i32
      %c0_i32_8 = arith.constant 0 : i32
      %16 = arith.cmpi ne, %15, %c0_i32_8 : i32
      scf.if %16 {
        %c5_12 = arith.constant 5 : index
        %25 = memref.load %arg8[%c5_12] : memref<8xf32, #tpu.memory_space<smem>>
        %c6_13 = arith.constant 6 : index
        %26 = memref.load %arg8[%c6_13] : memref<8xf32, #tpu.memory_space<smem>>
        %cst_14 = arith.constant 0.000000e+00 : f32
        %27 = arith.cmpf olt, %25, %cst_14 : f32
        %cst_15 = arith.constant 0.000000e+00 : f32
        %28 = arith.cmpf ogt, %26, %cst_15 : f32
        %29 = arith.andi %27, %28 : i1
        %cst_16 = arith.constant 0.000000e+00 : f32
        %cst_17 = arith.constant 0.000000e+00 : f32
        %30 = arith.select %29, %cst_16, %cst_17 : f32
        %c2 = arith.constant 2 : index
        %31 = memref.load %arg8[%c2] : memref<8xf32, #tpu.memory_space<smem>>
        %32 = arith.subf %31, %30 : f32
        %c3 = arith.constant 3 : index
        %33 = memref.load %arg8[%c3] : memref<8xf32, #tpu.memory_space<smem>>
        %34 = arith.divf %33, %32 : f32
        %c4 = arith.constant 4 : index
        %35 = memref.load %arg8[%c4] : memref<8xf32, #tpu.memory_space<smem>>
        %36 = arith.mulf %33, %34 : f32
        %37 = arith.subf %35, %36 : f32
        %cst_18 = arith.constant 1.000000e+00 : f32
        %38 = arith.subf %32, %cst_18 : f32
        %39 = arith.divf %37, %38 : f32
        %cst_19 = arith.constant 1.000000e-01 : f32
        %40 = arith.mulf %cst_19, %34 : f32
        %cst_20 = arith.constant 0.000000e+00 : f32
        %41 = arith.addf %cst_20, %40 : f32
        %cst_21 = arith.constant 1.000000e-01 : f32
        %42 = arith.mulf %cst_21, %39 : f32
        %cst_22 = arith.constant 0.899999976 : f32
        %43 = arith.addf %cst_22, %42 : f32
        %c0_23 = arith.constant 0 : index
        %44 = memref.load %arg6[%c0_23] : memref<1xf32, #tpu.memory_space<smem>>
        memref.store %41, %arg6[%c0_23] : memref<1xf32, #tpu.memory_space<smem>>
        %c0_24 = arith.constant 0 : index
        %45 = memref.load %arg7[%c0_24] : memref<1xf32, #tpu.memory_space<smem>>
        memref.store %43, %arg7[%c0_24] : memref<1xf32, #tpu.memory_space<smem>>
        %c0_25 = arith.constant 0 : index
        %46 = memref.load %arg3[%c0_25] : memref<1xf32, #tpu.memory_space<smem>>
        %47 = arith.addf %43, %cst_5 : f32
        %48 = math.sqrt %47 : f32
        %49 = arith.divf %46, %48 : f32
        %c5_26 = arith.constant 5 : index
        %50 = memref.load %arg8[%c5_26] : memref<8xf32, #tpu.memory_space<smem>>
        memref.store %49, %arg8[%c5_26] : memref<8xf32, #tpu.memory_space<smem>>
        %c0_27 = arith.constant 0 : index
        %51 = memref.load %arg4[%c0_27] : memref<1xf32, #tpu.memory_space<smem>>
        %52 = arith.mulf %41, %49 : f32
        %53 = arith.subf %51, %52 : f32
        %c6_28 = arith.constant 6 : index
        %54 = memref.load %arg8[%c6_28] : memref<8xf32, #tpu.memory_space<smem>>
        memref.store %53, %arg8[%c6_28] : memref<8xf32, #tpu.memory_space<smem>>
      } else {
      }
      %c0 = arith.constant 0 : index
      %c0_9 = arith.constant 0 : index
      %17 = vector.load %arg2[%c0, %c0_9] : memref<16x128xf32, #tpu.memory_space<vmem>>, vector<16x128xf32>
      %c5 = arith.constant 5 : index
      %18 = memref.load %arg8[%c5] : memref<8xf32, #tpu.memory_space<smem>>
      %19 = vector.broadcast %18 : f32 to vector<16x128xf32>
      %20 = arith.mulf %17, %19 : vector<16x128xf32>
      %c6 = arith.constant 6 : index
      %21 = memref.load %arg8[%c6] : memref<8xf32, #tpu.memory_space<smem>>
      %22 = vector.broadcast %21 : f32 to vector<16x128xf32>
      %23 = arith.addf %20, %22 : vector<16x128xf32>
      %c0_10 = arith.constant 0 : index
      %c0_11 = arith.constant 0 : index
      %24 = vector.load %arg5[%c0_10, %c0_11] : memref<16x128xf32, #tpu.memory_space<vmem>>, vector<16x128xf32>
      tpu.vector_store %arg5[%c0_10, %c0_11], %23 {strides = array<i32>} : memref<16x128xf32, #tpu.memory_space<vmem>>, vector<16x128xf32>,
    } else {
    }
    return
  }
  func.func @transform_0(%arg0: i32, %arg1: i32) -> (i32, i32) {
    %c0_i32 = arith.constant 0 : i32
    %c0_i32_0 = arith.constant 0 : i32
    return %arg1, %c0_i32 : i32, i32
  }
  func.func @transform_1(%arg0: i32, %arg1: i32) -> i32 {
    %c0_i32 = arith.constant 0 : i32
    %c0_i32_0 = arith.constant 0 : i32
    return %c0_i32 : i32
  }
  func.func @transform_2(%arg0: i32, %arg1: i32) -> i32 {
    %c0_i32 = arith.constant 0 : i32
    %c0_i32_0 = arith.constant 0 : i32
    return %c0_i32 : i32
  }
  func.func @transform_3(%arg0: i32, %arg1: i32) -> (i32, i32) {
    %c2_i32 = arith.constant 2 : i32
    %0 = arith.cmpi eq, %arg0, %c2_i32 : i32
    %c0_i32 = arith.constant 0 : i32
    %1 = arith.select %0, %arg1, %c0_i32 : i32
    %c0_i32_0 = arith.constant 0 : i32
    %c0_i32_1 = arith.constant 0 : i32
    return %1, %c0_i32_0 : i32, i32
  }
  func.func @transform_4(%arg0: i32, %arg1: i32) -> i32 {
    %c0_i32 = arith.constant 0 : i32
    %c0_i32_0 = arith.constant 0 : i32
    return %c0_i32 : i32
  }
  func.func @transform_5(%arg0: i32, %arg1: i32) -> i32 {
    %c0_i32 = arith.constant 0 : i32
    %c0_i32_0 = arith.constant 0 : i32
    return %c0_i32 : i32
  }
}

</mosaic_0001>

<bundles_post_ra>
// kernel: tpu_custom_call.1
= control target key start
LH: loop header
LB: loop body
LE: loop exit
PB: predicated region body
PF: predicated region fallthrough
CT: control target
= control target key end

     0   :  { %s1036_s0 = inlined_call_operand.hbm [shape: f32[16,128], index: 0, kind: input, shape index: {}]   ;;  %s1037_s1 = inlined_call_operand.<no memory space> [shape: f32[1], index: 1, kind: input, shape index: {}]   ;;  %s1038_s2 = inlined_call_operand.<no memory space> [shape: f32[1], index: 2, kind: input, shape index: {}]   ;;  %s1039_s3 = inlined_call_operand.hbm [shape: f32[16,128], index: 3, kind: output, shape index: {0}]   ;;  %s1040_s4 = inlined_call_operand.hbm [shape: f32[1], index: 4, kind: output, shape index: {1}]   ;;  %s1041_s5 = inlined_call_operand.hbm [shape: f32[1], index: 5, kind: output, shape index: {2}]  }
   0x1   :  { %11 = sst [smem:[#allocation3]] %s1037_s1 }
   0x2   :  { %12 = sst [smem:[#allocation4]] %s1038_s2 }
   0x3   :  { %13 = vsyncpa [#allocation6], 0 }
   0x4   :  { %14 = vsyncpa [#allocation7], 0 }
   0x5   :  { %16 = vsyncpa [#allocation7 + $0x1], 0 }
   0x6   :  { %17 = vsyncpa [#allocation8], 0 }
   0x7   :  { %18 = vsyncpa [#allocation12], 0  ;;  %s886_s22 = smov 0   ;;  %s888_s23 = smov 0  }
   0x8   :  { %s890_s24 = smov 0  }
   0x9 LB: > { %s586_s1 = sadd.s32 4294967295, %s838_s24   ;;  %s587_s2 = sadd.s32 4294967294, %s838_s24   ;;  %s838_s24 = sphi %s890_s24, %s24_s24   ;;  %s834_s23 = sphi %s888_s23, %s1052_s23   ;;  %s830_s22 = sphi %s886_s22, %s1051_s22  }
   0xa   : > { %s36_s25 = sadd.s32 1, %s834_s23  ;;  %p588_p0 = scmp.ge.s32.totalorder %s838_s24, 1 }
   0xb   : > { %p38_p1 = scmp.ge.s32.totalorder %s36_s25, 3  ;;  %p181_p2 = scmp.lt.s32.totalorder %s838_s24, 4 }
   0xc   : > { %p908_p3 = scmp.eq.s32.totalorder %s586_s1, 0  ;;  %s840_s28 = smov [#allocation5]  }
   0xd   : > { %s1054_s25 = smov (%p38_p1, %s36_s25), 0  ;;  %p914_p4 = pnand %p588_p0, %p181_p2 }
   0xe   : > { %s1045_s26 = scalar_select %p908_p3, 1, 0 }
   0xf   : > { %s1046_s27 = scalar_select %p914_p4, 1, 0 }
  0x10   : > { %s196_s29 = sshll.u32 %s840_s28, 4  ;;  %p661_p5 = pneg %p914_p4  ;;  %s197_s29 = int_to_ptr.vmem [resolvable:$true] %s196_s29 }
  0x11   : > { %s722_s8 = scalar_lea.hbm %s1036_s0, 256 }
  0x12   : > { %p922_p6 = pnand %p908_p3, %p661_p5  ;;  %p723_p7 = scmp.ne.s32.totalorder %s1036_s0, %s722_s8 }
  0x13   : > { %p729_p11 = scmp.lt.u32.totalorder %s722_s8, %s1036_s0 }
  0x14   : > { %p724_p8 = pneg %p922_p6 }
  0x16   : > { %p725_p9 = pnand %p724_p8, %p723_p7 }
  0x18   : > { %p726_p10 = pneg %p725_p9 }
  0x1a   : > { %p731_p12 = pnand %p729_p11, %p726_p10 }
  0x1c   : > { %734 = shalt.err (!%p731_p12)
}
  0x1d   : > { %s735_s13 = scalar_lea.vmem %s197_s29, 256  ;;  %p743_p2 = scmp.lt.s32.totalorder %s197_s29, %s197_s29 }
  0x1e   : > { %p736_p13 = scmp.ne.s32.totalorder %s197_s29, %s735_s13  ;;  %p744_p5 = scmp.lt.s32.totalorder %s735_s13, %s735_s13 }
  0x20   : > { %p738_p0 = pnand %p736_p13, %p724_p8  ;;  %p745_p3 = por %p744_p5, %p743_p2 }
  0x22   : > { %p739_p1 = pneg %p738_p0 }
  0x24   : > { %p746_p4 = pnand %p745_p3, %p739_p1 }
  0x26   : > { %749 = shalt.err (!%p746_p4)
}
  0x27   : > { %s841_s14 = smov 128   ;;  %s842_s15 = smov 8  }
  0x28   : > { %664 = dma.hbm_to_vmem [thread:$0]  (!%p922_p6), %s1036_s0, 256, %s197_s29, [#allocation6], %s841_s14, %s841_s14, %s842_s15  }
  0x29   : > { %p1048_p7 = scmp.ne.s32.totalorder %s1046_s27, 0 }
  0x2a   : > { %p1049_p9 = scmp.ne.s32.totalorder (!%p1048_p7), %s1045_s26, 0 }
  0x2b   : > { %218 = sbr.rel (%p1048_p7) target bundleno = 849 (0x351), region = 32 }
  0x32   : > { %813 = dma.done.wait (%p1049_p9), [#allocation6], 256  }
  0x33   : > { %815 = vsyncadd (%p1049_p9), [#allocation6], 4294967040  ;;  %p245_p3 = scmp.eq.s32.totalorder %s830_s22, 0  ;;  %s843_s18 = smov 0.0  }
  0x34   : > { %p593_p4 = scmp.ne.s32.totalorder %s830_s22, 0 }
  0x35   : > { %644 = sst [smem:[#allocation2]] (%p245_p3), %s843_s18  ;;  %v264_v0 = vld [vmem:[#allocation5] sm:$0xff] (!%p593_p4)  ;;  %v265_v1 = vld [vmem:[#allocation5 + $0x8] sm:$0xff] (!%p593_p4) }
  0x36   : > { %645 = sst [smem:[#allocation2 + $0x1]] (%p245_p3), %s843_s18  ;;  %263 = sbr.rel (%p593_p4) target bundleno = 268 (0x10c), region = 44 }
  0x37   : > { %646 = sst [smem:[#allocation2 + $0x2]] (%p245_p3), %s843_s18  ;;  %v267_v2 = vadd.f32 (!%p593_p4), %v265_v1, %v264_v0  ;;  %v281_v3 = vmul.f32 (!%p593_p4), %v264_v0, %v264_v0  ;;  %v282_v4 = vmul.f32 (!%p593_p4), %v265_v1, %v265_v1  ;;  %s266_s19 = sld [smem:[#allocation2]] (!%p593_p4) }
  0x38   : > { %647 = sst [smem:[#allocation2 + $0x3]] (%p245_p3), %s843_s18  ;;  %s594_s20 = sld [smem:[#allocation2 + $0x1]] (!%p593_p4) }
  0x39   : > { %648 = sst [smem:[#allocation2 + $0x4]] (%p245_p3), %s843_s18  ;;  %268 = vadd.xlane.f32.xlu0 (!%p593_p4), %v267_v2  ;;  %v283_v5 = vadd.f32 (!%p593_p4), %v282_v4, %v281_v3 }
  0x3d   : > { %284 = vadd.xlane.f32.xlu0 %v283_v5 }
  0xc6   : > { %v269_v6 = vpop.xlane.xlu0 %268 }
  0xc7   : > { %v270_v7 = vrot.slane %v269_v6, 4 }
  0xc9   : > { %v271_v8 = vadd.f32 %v270_v7, %v269_v6 }
  0xca   : > { %v285_v9 = vpop.xlane.xlu0 %284 }
  0xcb   : > { %v272_v10 = vrot.slane %v271_v8, 2  ;;  %v286_v11 = vrot.slane %v285_v9, 4 }
  0xcd   : > { %v287_v12 = vadd.f32 %v286_v11, %v285_v9  ;;  %v273_v13 = vadd.f32 %v272_v10, %v271_v8 }
  0xcf   : > { %v288_v14 = vrot.slane %v287_v12, 2  ;;  %v274_v15 = vrot.slane %v273_v13, 1 }
  0xd1   : > { %v289_v16 = vadd.f32 %v288_v14, %v287_v12  ;;  %v275_v17 = vadd.f32 %v274_v15, %v273_v13 }
  0xd3   : > { %620 = vpush %v275_v17  ;;  %v290_v18 = vrot.slane %v289_v16, 1 }
  0xd5   : > { %v291_v19 = vadd.f32 %v290_v18, %v289_v16 }
  0xd7   : > { %622 = vpush %v291_v19 }
 0x104   : > { %s621_s21 = spop %620 }
 0x105   : > { %s277_s26 = sadd.f32 %s621_s21, %s266_s19 }
 0x107   : > { %279 = sst [smem:[#allocation2]] %s277_s26 }
 0x108   : > { %s623_s27 = spop %622 }
 0x109   : > { %s293_s28 = sadd.f32 %s623_s27, %s594_s20 }
 0x10b   : > { %295 = sst [smem:[#allocation2 + $0x1]] %s293_s28 }
 0x10c PF: > { %p595_p6 = scmp.ne.s32.totalorder %s830_s22, 1 }
 0x10d   : > { %s303_s29 = sld [smem:[#allocation2]] (!%p595_p6)  ;;  %s596_s30 = sld [smem:[#allocation2 + $0x1]] (!%p595_p6)  ;;  %v332_v26 = vld [vmem:[#allocation5] sm:$0xff] (!%p595_p6)  ;;  %v333_v27 = vld [vmem:[#allocation5 + $0x8] sm:$0xff] (!%p595_p6)  ;;  %v844_v30 = vmov (!%p595_p6), 0.0  }
 0x10e   : > { %299 = sbr.rel (%p595_p6) target bundleno = 575 (0x23f), region = 48  ;;  %s599_s15 = sld [smem:[#allocation2 + $0x2]] (!%p595_p6) }
 0x10f   : > { %s602_s16 = sld [smem:[#allocation2 + $0x3]] (!%p595_p6)  ;;  %s603_s17 = sld [smem:[#allocation2 + $0x4]] (!%p595_p6) }
 0x113   : > { %s306_s6 = smul.f32 (!%p595_p6), 0.00048828125, %s303_s29 }
 0x115   : > { %s308_s7 = smul.f32 %s306_s6, %s303_s29 }
 0x117   : > { %s309_s8 = ssub.f32 %s596_s30, %s308_s7 }
 0x119   : > { %s312_s9 = smul.f32 0.0004885198, %s309_s8 }
 0x11b   : > { %s313_s10 = sadd.f32 1e-10, %s312_s9 }
 0x11d   : > { %v314_v20 = vstv %s313_s10 }
 0x11e   : > { %712 = vrsqrt.f32 %v314_v20  ;;  %vm317_vm0 = vcmp.eq.f32.partialorder %v314_v20, inf  ;;  %v320_v22 = vand.u32 2147483648, %v314_v20  ;;  %vm319_vm1 = vcmp.eq.f32.partialorder %v314_v20, 0.0 }
 0x128   : > { %v713_v21 = vpop.eup %712 }
 0x129   : > { %v316_v23 = vmul.f32 %v713_v21, %v314_v20 }
 0x12b   : > { %v318_v24 = vsel %vm317_vm0, %v314_v20, %v316_v23 }
 0x12c   : > { %v321_v25 = vsel %vm319_vm1, %v320_v22, %v318_v24 }
 0x12d   : > { %624 = vpush %v321_v25 }
 0x15e   : > { %s625_s11 = spop %624 }
 0x15f   : > { %s323_s12 = smul.f32 4.0, %s625_s11 }
 0x161   : > { %s324_s13 = ssub.f32 %s306_s6, %s323_s12 }
 0x162   : > { %s327_s14 = sadd.f32 %s323_s12, %s306_s6 }
 0x163   : > { %326 = sst [smem:[#allocation2 + $0x5]] %s324_s13  ;;  %v334_v28 = vstv %s324_s13 }
 0x164   : > { %329 = sst [smem:[#allocation2 + $0x6]] %s327_s14  ;;  %vm335_vm2 = vcmp.gt.f32.partialorder %v332_v26, %v334_v28  ;;  %vm336_vm3 = vcmp.gt.f32.partialorder %v333_v27, %v334_v28  ;;  %v337_v29 = vstv %s327_s14 }
 0x165   : > { %vm338_vm4 = vcmp.lt.f32.partialorder %v332_v26, %v337_v29  ;;  %vm339_vm5 = vcmp.lt.f32.partialorder %v333_v27, %v337_v29 }
 0x166   : > { %vm340_vm6 = vmand %vm335_vm2, %vm338_vm4 }
 0x167   : > { %vm341_vm7 = vmand %vm336_vm3, %vm339_vm5  ;;  %v600_v31 = vsel %vm340_vm6, 1.0, %v844_v30  ;;  %v342_v32 = vsel %vm340_vm6, %v332_v26, 0.0 }
 0x168   : > { %v601_v33 = vsel %vm341_vm7, 1.0, %v844_v30  ;;  %v343_v34 = vsel %vm341_vm7, %v333_v27, 0.0  ;;  %v377_v35 = vmul.f32 %v342_v32, %v332_v26 }
 0x169   : > { %v349_v36 = vadd.f32 %v601_v33, %v600_v31  ;;  %v378_v37 = vmul.f32 %v343_v34, %v333_v27  ;;  %v363_v39 = vadd.f32 %v343_v34, %v342_v32 }
 0x16b   : > { %350 = vadd.xlane.f32.xlu0 %v349_v36  ;;  %v379_v38 = vadd.f32 %v378_v37, %v377_v35 }
 0x16d   : > { %380 = vadd.xlane.f32.xlu1 %v379_v38 }
 0x16f   : > { %364 = vadd.xlane.f32.xlu0 %v363_v39 }
 0x1f8   : > { %v351_v40 = vpop.xlane.xlu0 %350 }
 0x1f9   : > { %v352_v41 = vrot.slane %v351_v40, 4 }
 0x1fa   : > { %v381_v42 = vpop.xlane.xlu1 %380 }
 0x1fb   : > { %v353_v43 = vadd.f32 %v352_v41, %v351_v40  ;;  %v382_v44 = vrot.slane %v381_v42, 4 }
 0x1fc   : > { %v365_v45 = vpop.xlane.xlu0 %364 }
 0x1fd   : > { %v354_v46 = vrot.slane %v353_v43, 2  ;;  %v383_v47 = vadd.f32 %v382_v44, %v381_v42  ;;  %v366_v48 = vrot.slane %v365_v45, 4 }
 0x1ff   : > { %v384_v49 = vrot.slane %v383_v47, 2  ;;  %v367_v50 = vadd.f32 %v366_v48, %v365_v45  ;;  %v355_v51 = vadd.f32 %v354_v46, %v353_v43 }
 0x201   : > { %v385_v52 = vadd.f32 %v384_v49, %v383_v47  ;;  %v368_v53 = vrot.slane %v367_v50, 2  ;;  %v356_v54 = vrot.slane %v355_v51, 1 }
 0x203   : > { %v369_v55 = vadd.f32 %v368_v53, %v367_v50  ;;  %v357_v56 = vadd.f32 %v356_v54, %v355_v51  ;;  %v386_v57 = vrot.slane %v385_v52, 1 }
 0x205   : > { %626 = vpush %v357_v56  ;;  %v370_v58 = vrot.slane %v369_v55, 1  ;;  %v387_v60 = vadd.f32 %v386_v57, %v385_v52 }
 0x207   : > { %v371_v59 = vadd.f32 %v370_v58, %v369_v55 }
 0x209   : > { %628 = vpush %v371_v59 }
 0x20a   : > { %630 = vpush %v387_v60 }
 0x236   : > { %s627_s18 = spop %626 }
 0x237   : > { %s359_s19 = sadd.f32 %s627_s18, %s599_s15 }
 0x239   : > { %361 = sst [smem:[#allocation2 + $0x2]] %s359_s19 }
 0x23a   : > { %s629_s20 = spop %628 }
 0x23b   : > { %s373_s21 = sadd.f32 %s629_s20, %s602_s16  ;;  %s631_s26 = spop %630 }
 0x23c   : > { %s389_s27 = sadd.f32 %s631_s26, %s603_s17 }
 0x23d   : > { %375 = sst [smem:[#allocation2 + $0x3]] %s373_s21 }
 0x23e   : > { %391 = sst [smem:[#allocation2 + $0x4]] %s389_s27 }
 0x23f PF: > { %p604_p8 = scmp.ne.s32.totalorder %s830_s22, 2 }
 0x240   : > { %s605_s28 = sld [smem:[#allocation2 + $0x2]] (!%p604_p8)  ;;  %s606_s30 = sld [smem:[#allocation2 + $0x3]] (!%p604_p8)  ;;  %v443_v9 = vld [vmem:[#allocation5] sm:$0xff] (!%p604_p8)  ;;  %v444_v10 = vld [vmem:[#allocation5 + $0x8] sm:$0xff] (!%p604_p8) }
 0x241   : > { %395 = sbr.rel (%p604_p8) target bundleno = 797 (0x31d), region = 56  ;;  %s607_s6 = sld [smem:[#allocation2 + $0x4]] (!%p604_p8) }
 0x242   : > { %s421_s17 = sld [smem:[#allocation3]] (!%p604_p8) }
 0x243   : > { %s438_s18 = sld [smem:[#allocation4]] (!%p604_p8) }
 0x246   : > { %v401_v61 = vstv (!%p604_p8), %s605_s28  ;;  %s608_s29 = sadd.f32 (!%p604_p8), -1.0, %s605_s28 }
 0x247   : > { %714 = vrcp.f32 (!%p604_p8), %v401_v61 }
 0x248   : > { %v409_v62 = vstv %s608_s29 }
 0x249   : > { %716 = vrcp.f32 %v409_v62 }
 0x251   : > { %v715_v63 = vpop.eup %714 }
 0x252   : > { %632 = vpush %v715_v63 }
 0x253   : > { %v717_v0 = vpop.eup %716 }
 0x254   : > { %634 = vpush %v717_v0 }
 0x283   : > { %s633_s7 = spop %632 }
 0x284   : > { %s952_s8 = smul.f32 %s633_s7, %s606_s30 }
 0x285   : > { %s635_s10 = spop %634 }
 0x286   : > { %s406_s22 = smul.f32 %s606_s30, %s952_s8 }
 0x287   : > { %s413_s9 = smul.f32 0.1, %s952_s8 }
 0x288   : > { %s407_s11 = ssub.f32 %s607_s6, %s406_s22 }
 0x289   : > { %418 = sst [smem:[#allocation10]] %s413_s9 }
 0x28a   : > { %s412_s12 = smul.f32 %s635_s10, %s407_s11 }
 0x28c   : > { %s415_s13 = smul.f32 0.1, %s412_s12 }
 0x28e   : > { %s416_s14 = sadd.f32 0.9, %s415_s13 }
 0x290   : > { %420 = sst [smem:[#allocation11]] %s416_s14 }
 0x291   : > { %s422_s15 = sadd.f32 1e-10, %s416_s14 }
 0x293   : > { %v423_v1 = vstv %s422_s15 }
 0x294   : > { %718 = vrsqrt.f32 %v423_v1  ;;  %vm426_vm8 = vcmp.eq.f32.partialorder %v423_v1, inf  ;;  %v429_v4 = vand.u32 2147483648, %v423_v1  ;;  %vm428_vm9 = vcmp.eq.f32.partialorder %v423_v1, 0.0 }
 0x29e   : > { %v719_v2 = vpop.eup %718 }
 0x29f   : > { %v425_v3 = vmul.f32 %v719_v2, %v423_v1 }
 0x2a1   : > { %v427_v5 = vsel %vm426_vm8, %v423_v1, %v425_v3 }
 0x2a2   : > { %v430_v6 = vsel %vm428_vm9, %v429_v4, %v427_v5 }
 0x2a3   : > { %636 = vpush %v430_v6 }
 0x2d4   : > { %s637_s16 = spop %636 }
 0x2d5   : > { %v432_v7 = vstv %s637_s16 }
 0x2d6   : > { %720 = vrcp.f32 %v432_v7 }
 0x2e0   : > { %v721_v8 = vpop.eup %720 }
 0x2e1   : > { %638 = vpush %v721_v8 }
 0x312   : > { %s639_s19 = spop %638 }
 0x313   : > { %s435_s20 = smul.f32 %s639_s19, %s421_s17 }
 0x315   : > { %437 = sst [smem:[#allocation2 + $0x5]] %s435_s20  ;;  %s439_s21 = smul.f32 %s435_s20, %s413_s9  ;;  %v446_v11 = vstv %s435_s20 }
 0x316   : > { %v447_v12 = vmul.f32 %v446_v11, %v443_v9  ;;  %v448_v13 = vmul.f32 %v446_v11, %v444_v10 }
 0x317   : > { %s440_s26 = ssub.f32 %s438_s18, %s439_s21 }
 0x319   : > { %442 = sst [smem:[#allocation2 + $0x6]] %s440_s26  ;;  %v450_v14 = vstv %s440_s26 }
 0x31a   : > { %v451_v15 = vadd.f32 %v450_v14, %v447_v12  ;;  %v452_v16 = vadd.f32 %v450_v14, %v448_v13 }
 0x31c   : > { %453 = vst [vmem:[#allocation9] sm:$0xff] %v451_v15  ;;  %454 = vst [vmem:[#allocation9 + $0x8] sm:$0xff] %v452_v16 }
 0x31d PF: > { %p962_p10 = scmp.eq.s32.totalorder %s586_s1, 2  ;;  %s845_s28 = smov [#allocation9]  }
 0x31e   : > { %s471_s29 = sshll.u32 %s845_s28, 4  ;;  %s472_s29 = int_to_ptr.vmem [resolvable:$true] %s471_s29 }
 0x31f   : > { %s750_s30 = scalar_lea.vmem %s472_s29, 256  ;;  %s756_s6 = scalar_lea.vmem %s472_s29, 512 }
 0x320   : > { %p751_p11 = scmp.ne.s32.totalorder %s472_s29, %s750_s30  ;;  %p757_p0 = scmp.lt.s32.totalorder %s472_s29, %s472_s29 }
 0x321   : > { %p758_p1 = scmp.lt.s32.totalorder %s756_s6, %s750_s30 }
 0x322   : > { %p752_p12 = pnand %p751_p11, %p962_p10 }
 0x323   : > { %p759_p2 = por %p758_p1, %p757_p0 }
 0x324   : > { %p753_p13 = pneg %p752_p12 }
 0x326   : > { %p760_p5 = pnand %p759_p2, %p753_p13 }
 0x328   : > { %763 = shalt.err (!%p760_p5)
}
 0x329   : > { %s764_s8 = scalar_lea.hbm %s1039_s3, 256 }
 0x32a   : > { %p765_p7 = scmp.ne.s32.totalorder %s1039_s3, %s764_s8  ;;  %p770_p4 = scmp.lt.u32.totalorder %s764_s8, %s1039_s3 }
 0x32c   : > { %p766_p9 = pnand %p765_p7, %p962_p10 }
 0x32e   : > { %p767_p3 = pneg %p766_p9 }
 0x330   : > { %p772_p6 = pnand %p770_p4, %p767_p3 }
 0x332   : > { %775 = shalt.err (!%p772_p6)
}
 0x333   : > { %s846_s12 = smov 128   ;;  %s847_s13 = smov 8  }
 0x334   : > { %650 = dma.vmem_to_hbm [thread:$0]  (%p962_p10), %s472_s29, 256, %s1039_s3, [#allocation7], %s846_s12, %s846_s12, %s847_s13  }
 0x335   : > { %s776_s18 = scalar_lea.hbm %s1040_s4, 16 }
 0x336   : > { %p777_p8 = scmp.ne.s32.totalorder %s1040_s4, %s776_s18  ;;  %p782_p13 = scmp.lt.u32.totalorder %s776_s18, %s1040_s4 }
 0x338   : > { %p778_p11 = pnand %p777_p8, %p962_p10 }
 0x33a   : > { %p779_p12 = pneg %p778_p11 }
 0x33c   : > { %p784_p0 = pnand %p782_p13, %p779_p12 }
 0x33e   : > { %787 = shalt.err (!%p784_p0)
}
 0x33f   : > { %s848_s28 = smov [#allocation10]   ;;  %s788_s1 = scalar_lea.hbm %s1041_s5, 16 }
 0x340   : > { %652 = dma.smem_to_hbm (%p962_p10), %s848_s28, 16, %s1040_s4, [#allocation8]  }
 0x341   : > { %p789_p1 = scmp.ne.s32.totalorder %s1041_s5, %s788_s1  ;;  %p794_p7 = scmp.lt.u32.totalorder %s788_s1, %s1041_s5 }
 0x343   : > { %p790_p2 = pnand %p789_p1, %p962_p10 }
 0x345   : > { %p791_p5 = pneg %p790_p2 }
 0x347   : > { %p796_p9 = pnand %p794_p7, %p791_p5 }
 0x349   : > { %799 = shalt.err (!%p796_p9)
}
 0x34a   : > { %s849_s11 = smov [#allocation11]  }
 0x34b   : > { %654 = dma.smem_to_hbm (%p962_p10), %s849_s11, 16, %s1041_s5, [#allocation12]  }
 0x34c   : > { %817 = dma.done.wait (%p962_p10), [#allocation8], 16  }
 0x34d   : > { %819 = vsyncadd (%p962_p10), [#allocation8], 4294967280 }
 0x34e   : > { %821 = dma.done.wait (%p962_p10), [#allocation12], 16  }
 0x34f   : > { %823 = vsyncadd (%p962_p10), [#allocation12], 4294967280 }
 0x350   : > { %504 = sfence }
 0x351 PF: > { %p676_p3 = scmp.ge.s32.totalorder %s838_s24, 2  ;;  %p677_p4 = scmp.eq.s32.totalorder %s587_s2, 2 }
 0x353   : > { %p666_p6 = pnand %p677_p4, %p676_p3 }
 0x355   : > { %825 = dma.done.wait (!%p666_p6), [#allocation7], 256  }
 0x356   : > { %827 = vsyncadd (!%p666_p6), [#allocation7], 4294967040  ;;  %s24_s24 = sadd.s32 1, %s838_s24   ;;  %s1051_s22 = smov %s834_s23 }
 0x357   : > { %p21_p8 = scmp.ge.s32.totalorder %s24_s24, 5   ;;  %s1052_s23 = smov %s1054_s25 }
 0x359   :  { %23 = sbr.rel (!%p21_p8) target bundleno = 9 (0x9), region = 127 }
 0x360   :  { %519 = vsyncpa [#allocation6], 1 }
 0x361   :  { %521 = vsyncpa [#allocation6 + $0x1], 1 }
 0x362   :  { %522 = vsyncpa [#allocation7], 1 }
 0x363   :  { %524 = vsyncpa [#allocation7 + $0x1], 1 }
 0x364   :  { %525 = vsyncpa [#allocation8], 1 }
 0x365   :  { %527 = vsyncpa [#allocation8 + $0x1], 1 }
 0x366   :  { %528 = vsyncpa [#allocation12], 1 }

</bundles_post_ra>
